<compile_context>
chip_gen: v7x
topology: tpu7x:2x2x1
jax: 0.10.0
libtpu: 0.0.40
codegen_flags: <defaults>
</compile_context>

<pallas_src>
import functools
import math

import jax
import jax.numpy as jnp
from jax import lax
from jax.experimental import pallas as pl
from jax.experimental.pallas import tpu as pltpu


# ---------------------------------------------------------------------------
# Fused Pallas kernel: QKV projection + attention + output projection
# ---------------------------------------------------------------------------

def _fused_mha_kernel(q_ref, k_ref, v_ref,
                      wq_ref, wk_ref, wv_ref, wo_ref,
                      bq_ref, bk_ref, bv_ref, bo_ref,
                      o_ref, *, heads, d_k):
    x_q = q_ref[0]  # (S, D) bf16 (cast in wrapper)
    x_k = k_ref[0]
    x_v = v_ref[0]

    # Projections: bf16 operands into the MXU, f32 accumulation.
    # Weights pre-transposed to (d_in, d_out); 1/sqrt(d_k) already folded into wq/bq.
    qp = jnp.dot(x_q, wq_ref[...], preferred_element_type=jnp.float32) + bq_ref[...]
    kp = jnp.dot(x_k, wk_ref[...], preferred_element_type=jnp.float32) + bk_ref[...]
    vp = jnp.dot(x_v, wv_ref[...], preferred_element_type=jnp.float32) + bv_ref[...]

    # Per-head attention (static unrolled loop; heads is small here).
    head_outs = []
    for h in range(heads):
        lo = h * d_k
        qh = qp[:, lo:lo + d_k].astype(jnp.bfloat16)   # (S, d_k)
        kh = kp[:, lo:lo + d_k].astype(jnp.bfloat16)
        vh = vp[:, lo:lo + d_k].astype(jnp.bfloat16)
        # scores = q @ k^T (contraction on d_k of both operands; no explicit .T)
        s = lax.dot_general(qh, kh, (((1,), (1,)), ((), ())),
                            preferred_element_type=jnp.float32)   # (S, S) f32
        s = s - jnp.max(s, axis=-1, keepdims=True)
        p = jnp.exp(s)
        # EUP reciprocal for the softmax denominator (off the VALU/MXU critical path).
        p = p * pl.reciprocal(jnp.sum(p, axis=-1, keepdims=True), approx=False)
        o_h = jnp.dot(p.astype(jnp.bfloat16), vh,
                      preferred_element_type=jnp.float32)          # (S, d_k)
        head_outs.append(o_h.astype(jnp.bfloat16))

    # Concat-then-project: one lane-dense (S, D) @ (D, D) matmul (full MXU fill,
    # single result drain) instead of `heads` K=d_k matmuls.
    concat = jnp.concatenate(head_outs, axis=-1)                   # (S, D) bf16
    o_ref[0] = (jnp.dot(concat, wo_ref[...], preferred_element_type=jnp.float32)
                + bo_ref[...])


# ---------------------------------------------------------------------------
# Wrapper
# ---------------------------------------------------------------------------

def multi_head_attention(q, k, v, params, heads):
    bs, num_exp, seq, d_model = q.shape
    d_k = d_model // heads
    groups = bs * num_exp
    sm_scale = 1.0 / math.sqrt(d_k)

    # Flatten (bs, num_exp) into the grid axis (contiguous, free reshape) and cast
    # activations to bf16 once in XLA: halves input HBM traffic, MXU-native dtype.
    qf = q.reshape(groups, seq, d_model).astype(jnp.bfloat16)
    kf = k.reshape(groups, seq, d_model).astype(jnp.bfloat16)
    vf = v.reshape(groups, seq, d_model).astype(jnp.bfloat16)

    # Pre-transpose nn.Linear weights to (d_in, d_out), fold the softmax scale into
    # the q projection, and cast weights to bf16 (done once, amortized over groups).
    wq_t = (params["wq"].T * sm_scale).astype(jnp.bfloat16)
    wk_t = params["wk"].T.astype(jnp.bfloat16)
    wv_t = params["wv"].T.astype(jnp.bfloat16)
    wo_t = params["wo"].T.astype(jnp.bfloat16)
    bq = (params["bq"] * sm_scale).reshape(1, d_model)   # biases stay f32 (post-acc add)
    bk = params["bk"].reshape(1, d_model)
    bv = params["bv"].reshape(1, d_model)
    bo = params["bo"].reshape(1, d_model)

    kernel = functools.partial(_fused_mha_kernel, heads=heads, d_k=d_k)

    act_spec = pl.BlockSpec((1, seq, d_model), lambda g: (g, 0, 0))
    # Grid-invariant operands: constant index_map -> single-buffer them (double
    # buffering would be pure VMEM waste; matters at large d_model / on v7x 64 MiB).
    w_spec = pl.BlockSpec((d_model, d_model), lambda g: (0, 0),
                          pipeline_mode=pl.Buffered(1))
    b_spec = pl.BlockSpec((1, d_model), lambda g: (0, 0),
                          pipeline_mode=pl.Buffered(1))

    out = pl.pallas_call(
        kernel,
        out_shape=jax.ShapeDtypeStruct((groups, seq, d_model), jnp.float32),
        grid=(groups,),
        in_specs=[act_spec, act_spec, act_spec,
                  w_spec, w_spec, w_spec, w_spec,
                  b_spec, b_spec, b_spec, b_spec],
        out_specs=pl.BlockSpec((1, seq, d_model), lambda g: (g, 0, 0)),
        compiler_params=pltpu.CompilerParams(
            dimension_semantics=("parallel",),        # megacore: groups across TCs
            vmem_limit_bytes=64 * 1024 * 1024),       # explicit; fits v5e/v6e/v7x
    )(qf, kf, vf, wq_t, wk_t, wv_t, wo_t, bq, bk, bv, bo)

    return out.reshape(bs, num_exp, seq, d_model)


# ---------------------------------------------------------------------------
# Params / reference
# ---------------------------------------------------------------------------

def init_params(key, d_model):
    ks = jax.random.split(key, 8)
    bound = 1.0 / math.sqrt(d_model)  # PyTorch nn.Linear default init range
    def w(k):
        return jax.random.uniform(k, (d_model, d_model), jnp.float32, -bound, bound)
    def b(k):
        return jax.random.uniform(k, (d_model,), jnp.float32, -bound, bound)
    return {
        "wq": w(ks[0]), "bq": b(ks[1]),
        "wk": w(ks[2]), "bk": b(ks[3]),
        "wv": w(ks[4]), "bv": b(ks[5]),
        "wo": w(ks[6]), "bo": b(ks[7]),
    }


def reference_mha(q, k, v, params, heads):
    """Pure-JAX f32 reference mirroring the PyTorch forward (mask=None, eval)."""
    bs, num_exp, seq, d_model = q.shape
    d_k = d_model // heads
    def lin(x, w, b):
        return x @ w.T + b
    def split(x):
        return jnp.transpose(
            x.reshape(bs, num_exp, seq, heads, d_k), (0, 1, 3, 2, 4))
    qh, kh, vh = (split(lin(t, params["w" + n], params["b" + n]))
                  for t, n in ((q, "q"), (k, "k"), (v, "v")))
    scores = jnp.einsum("benqd,benkd->benqk", qh, kh) / math.sqrt(d_k)
    scores = jax.nn.softmax(scores, axis=-1)
    o = jnp.einsum("benqk,benkd->benqd", scores, vh)
    concat = jnp.transpose(o, (0, 1, 3, 2, 4)).reshape(bs, num_exp, seq, d_model)
    return lin(concat, params["wo"], params["bo"])


if __name__ == "__main__":
    bs, num_exp, seq, d_model, heads = 2, 2, 8, 32, 4

    key = jax.random.PRNGKey(0)
    kq, kk, kv, kp = jax.random.split(key, 4)
    q = jax.random.normal(kq, (bs, num_exp, seq, d_model), jnp.float32)
    k = jax.random.normal(kk, (bs, num_exp, seq, d_model), jnp.float32)
    v = jax.random.normal(kv, (bs, num_exp, seq, d_model), jnp.float32)
    params = init_params(kp, d_model)

    out = multi_head_attention(q, k, v, params, heads)
    out = jax.block_until_ready(out)

    ref = reference_mha(q, k, v, params, heads)
    assert out.shape == (bs, num_exp, seq, d_model)
    max_err = float(jnp.max(jnp.abs(out - ref)))
    # Tolerance accounts for bf16 MXU operands (f32 accumulation) vs the pure-f32
    # reference; structure is otherwise exact (max-subtracted softmax, folded scale).
    assert jnp.allclose(out, ref, atol=5e-2, rtol=5e-2), (
        f"mismatch vs reference (max abs err {max_err})")

    print("KERNEL_OK")
</pallas_src>

<mosaic_0001>
module attributes {stable_mosaic.version = 11 : i64} {
  func.func @_fused_mha_kernel(%arg0: i32, %arg1: memref<1x8x32xbf16, #tpu.memory_space<vmem>>, %arg2: memref<1x8x32xbf16, #tpu.memory_space<vmem>>, %arg3: memref<1x8x32xbf16, #tpu.memory_space<vmem>>, %arg4: memref<32x32xbf16, #tpu.memory_space<vmem>>, %arg5: memref<32x32xbf16, #tpu.memory_space<vmem>>, %arg6: memref<32x32xbf16, #tpu.memory_space<vmem>>, %arg7: memref<32x32xbf16, #tpu.memory_space<vmem>>, %arg8: memref<1x32xf32, #tpu.memory_space<vmem>>, %arg9: memref<1x32xf32, #tpu.memory_space<vmem>>, %arg10: memref<1x32xf32, #tpu.memory_space<vmem>>, %arg11: memref<1x32xf32, #tpu.memory_space<vmem>>, %arg12: memref<1x8x32xf32, #tpu.memory_space<vmem>>) attributes {dimension_semantics = [#tpu.dimension_semantics<parallel>], iteration_bounds = array<i64: 4>, scalar_prefetch = 0 : i64, scratch_operands = 0 : i64, tpu.core_type = #tpu.core_type<tc>, window_params = [{transform_indices = @transform_0, window_bounds = array<i64: 1, 8, 32>}, {transform_indices = @transform_1, window_bounds = array<i64: 1, 8, 32>}, {transform_indices = @transform_2, window_bounds = array<i64: 1, 8, 32>}, {pipeline_mode = #tpu.pipeline_mode<synchronous>, transform_indices = @transform_3, window_bounds = array<i64: 32, 32>}, {pipeline_mode = #tpu.pipeline_mode<synchronous>, transform_indices = @transform_4, window_bounds = array<i64: 32, 32>}, {pipeline_mode = #tpu.pipeline_mode<synchronous>, transform_indices = @transform_5, window_bounds = array<i64: 32, 32>}, {pipeline_mode = #tpu.pipeline_mode<synchronous>, transform_indices = @transform_6, window_bounds = array<i64: 32, 32>}, {pipeline_mode = #tpu.pipeline_mode<synchronous>, transform_indices = @transform_7, window_bounds = array<i64: 1, 32>}, {pipeline_mode = #tpu.pipeline_mode<synchronous>, transform_indices = @transform_8, window_bounds = array<i64: 1, 32>}, {pipeline_mode = #tpu.pipeline_mode<synchronous>, transform_indices = @transform_9, window_bounds = array<i64: 1, 32>}, {pipeline_mode = #tpu.pipeline_mode<synchronous>, transform_indices = @transform_10, window_bounds = array<i64: 1, 32>}, {transform_indices = @transform_11, window_bounds = array<i64: 1, 8, 32>}]} {
    %c0 = arith.constant 0 : index
    %c0_0 = arith.constant 0 : index
    %c0_1 = arith.constant 0 : index
    %0 = vector.load %arg1[%c0, %c0_0, %c0_1] : memref<1x8x32xbf16, #tpu.memory_space<vmem>>, vector<1x8x32xbf16>
    %1 = vector.shape_cast %0 : vector<1x8x32xbf16> to vector<8x32xbf16>
    %c0_2 = arith.constant 0 : index
    %c0_3 = arith.constant 0 : index
    %c0_4 = arith.constant 0 : index
    %2 = vector.load %arg2[%c0_2, %c0_3, %c0_4] : memref<1x8x32xbf16, #tpu.memory_space<vmem>>, vector<1x8x32xbf16>
    %3 = vector.shape_cast %2 : vector<1x8x32xbf16> to vector<8x32xbf16>
    %c0_5 = arith.constant 0 : index
    %c0_6 = arith.constant 0 : index
    %c0_7 = arith.constant 0 : index
    %4 = vector.load %arg3[%c0_5, %c0_6, %c0_7] : memref<1x8x32xbf16, #tpu.memory_space<vmem>>, vector<1x8x32xbf16>
    %5 = vector.shape_cast %4 : vector<1x8x32xbf16> to vector<8x32xbf16>
    %c0_8 = arith.constant 0 : index
    %c0_9 = arith.constant 0 : index
    %6 = vector.load %arg4[%c0_8, %c0_9] : memref<32x32xbf16, #tpu.memory_space<vmem>>, vector<32x32xbf16>
    %cst = arith.constant dense<0.000000e+00> : vector<8x32xf32>
    %7 = tpu.matmul %1, %6, %cst {dimension_numbers = #tpu.dot_dimension_numbers<[1], [0], [0], [1], [0, 0, 1, 1], [], []>} : vector<8x32xbf16>, vector<32x32xbf16>, vector<8x32xf32> -> vector<8x32xf32>
    %c0_10 = arith.constant 0 : index
    %c0_11 = arith.constant 0 : index
    %8 = vector.load %arg8[%c0_10, %c0_11] : memref<1x32xf32, #tpu.memory_space<vmem>>, vector<1x32xf32>
    %9 = vector.broadcast %8 : vector<1x32xf32> to vector<8x32xf32>
    %10 = arith.addf %7, %9 : vector<8x32xf32>
    %c0_12 = arith.constant 0 : index
    %c0_13 = arith.constant 0 : index
    %11 = vector.load %arg5[%c0_12, %c0_13] : memref<32x32xbf16, #tpu.memory_space<vmem>>, vector<32x32xbf16>
    %cst_14 = arith.constant dense<0.000000e+00> : vector<8x32xf32>
    %12 = tpu.matmul %3, %11, %cst_14 {dimension_numbers = #tpu.dot_dimension_numbers<[1], [0], [0], [1], [0, 0, 1, 1], [], []>} : vector<8x32xbf16>, vector<32x32xbf16>, vector<8x32xf32> -> vector<8x32xf32>
    %c0_15 = arith.constant 0 : index
    %c0_16 = arith.constant 0 : index
    %13 = vector.load %arg9[%c0_15, %c0_16] : memref<1x32xf32, #tpu.memory_space<vmem>>, vector<1x32xf32>
    %14 = vector.broadcast %13 : vector<1x32xf32> to vector<8x32xf32>
    %15 = arith.addf %12, %14 : vector<8x32xf32>
    %c0_17 = arith.constant 0 : index
    %c0_18 = arith.constant 0 : index
    %16 = vector.load %arg6[%c0_17, %c0_18] : memref<32x32xbf16, #tpu.memory_space<vmem>>, vector<32x32xbf16>
    %cst_19 = arith.constant dense<0.000000e+00> : vector<8x32xf32>
    %17 = tpu.matmul %5, %16, %cst_19 {dimension_numbers = #tpu.dot_dimension_numbers<[1], [0], [0], [1], [0, 0, 1, 1], [], []>} : vector<8x32xbf16>, vector<32x32xbf16>, vector<8x32xf32> -> vector<8x32xf32>
    %c0_20 = arith.constant 0 : index
    %c0_21 = arith.constant 0 : index
    %18 = vector.load %arg10[%c0_20, %c0_21] : memref<1x32xf32, #tpu.memory_space<vmem>>, vector<1x32xf32>
    %19 = vector.broadcast %18 : vector<1x32xf32> to vector<8x32xf32>
    %20 = arith.addf %17, %19 : vector<8x32xf32>
    %21 = vector.extract_strided_slice %10 {offsets = [0, 0], sizes = [8, 8], strides = [1, 1]} : vector<8x32xf32> to vector<8x8xf32>
    %22 = arith.truncf %21 : vector<8x8xf32> to vector<8x8xbf16>
    %23 = vector.extract_strided_slice %15 {offsets = [0, 0], sizes = [8, 8], strides = [1, 1]} : vector<8x32xf32> to vector<8x8xf32>
    %24 = arith.truncf %23 : vector<8x8xf32> to vector<8x8xbf16>
    %25 = vector.extract_strided_slice %20 {offsets = [0, 0], sizes = [8, 8], strides = [1, 1]} : vector<8x32xf32> to vector<8x8xf32>
    %26 = arith.truncf %25 : vector<8x8xf32> to vector<8x8xbf16>
    %cst_22 = arith.constant dense<0.000000e+00> : vector<8x8xf32>
    %27 = tpu.matmul %22, %24, %cst_22 {dimension_numbers = #tpu.dot_dimension_numbers<[1], [1], [0], [0], [0, 0, 1, 0], [], []>} : vector<8x8xbf16>, vector<8x8xbf16>, vector<8x8xf32> -> vector<8x8xf32>
    %cst_23 = arith.constant dense<0xFF800000> : vector<8xf32>
    %28 = vector.multi_reduction <maximumf>, %27, %cst_23 [1] : vector<8x8xf32> to vector<8xf32>
    %29 = vector.shape_cast %28 : vector<8xf32> to vector<8x1xf32>
    %30 = vector.broadcast %29 : vector<8x1xf32> to vector<8x8xf32>
    %31 = arith.subf %27, %30 : vector<8x8xf32>
    %32 = math.exp %31 : vector<8x8xf32>
    %cst_24 = arith.constant dense<0.000000e+00> : vector<8xf32>
    %33 = vector.multi_reduction <add>, %32, %cst_24 [1] : vector<8x8xf32> to vector<8xf32>
    %34 = vector.shape_cast %33 : vector<8xf32> to vector<8x1xf32>
    %35 = tpu.reciprocal %34 : vector<8x1xf32> -> vector<8x1xf32>
    %36 = vector.broadcast %35 : vector<8x1xf32> to vector<8x8xf32>
    %37 = arith.mulf %32, %36 : vector<8x8xf32>
    %38 = arith.truncf %37 : vector<8x8xf32> to vector<8x8xbf16>
    %cst_25 = arith.constant dense<0.000000e+00> : vector<8x8xf32>
    %39 = tpu.matmul %38, %26, %cst_25 {dimension_numbers = #tpu.dot_dimension_numbers<[1], [0], [0], [1], [0, 0, 1, 1], [], []>} : vector<8x8xbf16>, vector<8x8xbf16>, vector<8x8xf32> -> vector<8x8xf32>
    %40 = arith.truncf %39 : vector<8x8xf32> to vector<8x8xbf16>
    %41 = vector.extract_strided_slice %10 {offsets = [0, 8], sizes = [8, 8], strides = [1, 1]} : vector<8x32xf32> to vector<8x8xf32>
    %42 = arith.truncf %41 : vector<8x8xf32> to vector<8x8xbf16>
    %43 = vector.extract_strided_slice %15 {offsets = [0, 8], sizes = [8, 8], strides = [1, 1]} : vector<8x32xf32> to vector<8x8xf32>
    %44 = arith.truncf %43 : vector<8x8xf32> to vector<8x8xbf16>
    %45 = vector.extract_strided_slice %20 {offsets = [0, 8], sizes = [8, 8], strides = [1, 1]} : vector<8x32xf32> to vector<8x8xf32>
    %46 = arith.truncf %45 : vector<8x8xf32> to vector<8x8xbf16>
    %cst_26 = arith.constant dense<0.000000e+00> : vector<8x8xf32>
    %47 = tpu.matmul %42, %44, %cst_26 {dimension_numbers = #tpu.dot_dimension_numbers<[1], [1], [0], [0], [0, 0, 1, 0], [], []>} : vector<8x8xbf16>, vector<8x8xbf16>, vector<8x8xf32> -> vector<8x8xf32>
    %cst_27 = arith.constant dense<0xFF800000> : vector<8xf32>
    %48 = vector.multi_reduction <maximumf>, %47, %cst_27 [1] : vector<8x8xf32> to vector<8xf32>
    %49 = vector.shape_cast %48 : vector<8xf32> to vector<8x1xf32>
    %50 = vector.broadcast %49 : vector<8x1xf32> to vector<8x8xf32>
    %51 = arith.subf %47, %50 : vector<8x8xf32>
    %52 = math.exp %51 : vector<8x8xf32>
    %cst_28 = arith.constant dense<0.000000e+00> : vector<8xf32>
    %53 = vector.multi_reduction <add>, %52, %cst_28 [1] : vector<8x8xf32> to vector<8xf32>
    %54 = vector.shape_cast %53 : vector<8xf32> to vector<8x1xf32>
    %55 = tpu.reciprocal %54 : vector<8x1xf32> -> vector<8x1xf32>
    %56 = vector.broadcast %55 : vector<8x1xf32> to vector<8x8xf32>
    %57 = arith.mulf %52, %56 : vector<8x8xf32>
    %58 = arith.truncf %57 : vector<8x8xf32> to vector<8x8xbf16>
    %cst_29 = arith.constant dense<0.000000e+00> : vector<8x8xf32>
    %59 = tpu.matmul %58, %46, %cst_29 {dimension_numbers = #tpu.dot_dimension_numbers<[1], [0], [0], [1], [0, 0, 1, 1], [], []>} : vector<8x8xbf16>, vector<8x8xbf16>, vector<8x8xf32> -> vector<8x8xf32>
    %60 = arith.truncf %59 : vector<8x8xf32> to vector<8x8xbf16>
    %61 = vector.extract_strided_slice %10 {offsets = [0, 16], sizes = [8, 8], strides = [1, 1]} : vector<8x32xf32> to vector<8x8xf32>
    %62 = arith.truncf %61 : vector<8x8xf32> to vector<8x8xbf16>
    %63 = vector.extract_strided_slice %15 {offsets = [0, 16], sizes = [8, 8], strides = [1, 1]} : vector<8x32xf32> to vector<8x8xf32>
    %64 = arith.truncf %63 : vector<8x8xf32> to vector<8x8xbf16>
    %65 = vector.extract_strided_slice %20 {offsets = [0, 16], sizes = [8, 8], strides = [1, 1]} : vector<8x32xf32> to vector<8x8xf32>
    %66 = arith.truncf %65 : vector<8x8xf32> to vector<8x8xbf16>
    %cst_30 = arith.constant dense<0.000000e+00> : vector<8x8xf32>
    %67 = tpu.matmul %62, %64, %cst_30 {dimension_numbers = #tpu.dot_dimension_numbers<[1], [1], [0], [0], [0, 0, 1, 0], [], []>} : vector<8x8xbf16>, vector<8x8xbf16>, vector<8x8xf32> -> vector<8x8xf32>
    %cst_31 = arith.constant dense<0xFF800000> : vector<8xf32>
    %68 = vector.multi_reduction <maximumf>, %67, %cst_31 [1] : vector<8x8xf32> to vector<8xf32>
    %69 = vector.shape_cast %68 : vector<8xf32> to vector<8x1xf32>
    %70 = vector.broadcast %69 : vector<8x1xf32> to vector<8x8xf32>
    %71 = arith.subf %67, %70 : vector<8x8xf32>
    %72 = math.exp %71 : vector<8x8xf32>
    %cst_32 = arith.constant dense<0.000000e+00> : vector<8xf32>
    %73 = vector.multi_reduction <add>, %72, %cst_32 [1] : vector<8x8xf32> to vector<8xf32>
    %74 = vector.shape_cast %73 : vector<8xf32> to vector<8x1xf32>
    %75 = tpu.reciprocal %74 : vector<8x1xf32> -> vector<8x1xf32>
    %76 = vector.broadcast %75 : vector<8x1xf32> to vector<8x8xf32>
    %77 = arith.mulf %72, %76 : vector<8x8xf32>
    %78 = arith.truncf %77 : vector<8x8xf32> to vector<8x8xbf16>
    %cst_33 = arith.constant dense<0.000000e+00> : vector<8x8xf32>
    %79 = tpu.matmul %78, %66, %cst_33 {dimension_numbers = #tpu.dot_dimension_numbers<[1], [0], [0], [1], [0, 0, 1, 1], [], []>} : vector<8x8xbf16>, vector<8x8xbf16>, vector<8x8xf32> -> vector<8x8xf32>
    %80 = arith.truncf %79 : vector<8x8xf32> to vector<8x8xbf16>
    %81 = vector.extract_strided_slice %10 {offsets = [0, 24], sizes = [8, 8], strides = [1, 1]} : vector<8x32xf32> to vector<8x8xf32>
    %82 = arith.truncf %81 : vector<8x8xf32> to vector<8x8xbf16>
    %83 = vector.extract_strided_slice %15 {offsets = [0, 24], sizes = [8, 8], strides = [1, 1]} : vector<8x32xf32> to vector<8x8xf32>
    %84 = arith.truncf %83 : vector<8x8xf32> to vector<8x8xbf16>
    %85 = vector.extract_strided_slice %20 {offsets = [0, 24], sizes = [8, 8], strides = [1, 1]} : vector<8x32xf32> to vector<8x8xf32>
    %86 = arith.truncf %85 : vector<8x8xf32> to vector<8x8xbf16>
    %cst_34 = arith.constant dense<0.000000e+00> : vector<8x8xf32>
    %87 = tpu.matmul %82, %84, %cst_34 {dimension_numbers = #tpu.dot_dimension_numbers<[1], [1], [0], [0], [0, 0, 1, 0], [], []>} : vector<8x8xbf16>, vector<8x8xbf16>, vector<8x8xf32> -> vector<8x8xf32>
    %cst_35 = arith.constant dense<0xFF800000> : vector<8xf32>
    %88 = vector.multi_reduction <maximumf>, %87, %cst_35 [1] : vector<8x8xf32> to vector<8xf32>
    %89 = vector.shape_cast %88 : vector<8xf32> to vector<8x1xf32>
    %90 = vector.broadcast %89 : vector<8x1xf32> to vector<8x8xf32>
    %91 = arith.subf %87, %90 : vector<8x8xf32>
    %92 = math.exp %91 : vector<8x8xf32>
    %cst_36 = arith.constant dense<0.000000e+00> : vector<8xf32>
    %93 = vector.multi_reduction <add>, %92, %cst_36 [1] : vector<8x8xf32> to vector<8xf32>
    %94 = vector.shape_cast %93 : vector<8xf32> to vector<8x1xf32>
    %95 = tpu.reciprocal %94 : vector<8x1xf32> -> vector<8x1xf32>
    %96 = vector.broadcast %95 : vector<8x1xf32> to vector<8x8xf32>
    %97 = arith.mulf %92, %96 : vector<8x8xf32>
    %98 = arith.truncf %97 : vector<8x8xf32> to vector<8x8xbf16>
    %cst_37 = arith.constant dense<0.000000e+00> : vector<8x8xf32>
    %99 = tpu.matmul %98, %86, %cst_37 {dimension_numbers = #tpu.dot_dimension_numbers<[1], [0], [0], [1], [0, 0, 1, 1], [], []>} : vector<8x8xbf16>, vector<8x8xbf16>, vector<8x8xf32> -> vector<8x8xf32>
    %100 = arith.truncf %99 : vector<8x8xf32> to vector<8x8xbf16>
    %101 = tpu.concatenate %40, %60, %80, %100 in 1 : vector<8x8xbf16>, vector<8x8xbf16>, vector<8x8xbf16>, vector<8x8xbf16> -> vector<8x32xbf16>
    %c0_38 = arith.constant 0 : index
    %c0_39 = arith.constant 0 : index
    %102 = vector.load %arg7[%c0_38, %c0_39] : memref<32x32xbf16, #tpu.memory_space<vmem>>, vector<32x32xbf16>
    %cst_40 = arith.constant dense<0.000000e+00> : vector<8x32xf32>
    %103 = tpu.matmul %101, %102, %cst_40 {dimension_numbers = #tpu.dot_dimension_numbers<[1], [0], [0], [1], [0, 0, 1, 1], [], []>} : vector<8x32xbf16>, vector<32x32xbf16>, vector<8x32xf32> -> vector<8x32xf32>
    %c0_41 = arith.constant 0 : index
    %c0_42 = arith.constant 0 : index
    %104 = vector.load %arg11[%c0_41, %c0_42] : memref<1x32xf32, #tpu.memory_space<vmem>>, vector<1x32xf32>
    %105 = vector.broadcast %104 : vector<1x32xf32> to vector<8x32xf32>
    %106 = arith.addf %103, %105 : vector<8x32xf32>
    %c0_43 = arith.constant 0 : index
    %c0_44 = arith.constant 0 : index
    %c0_45 = arith.constant 0 : index
    %107 = vector.load %arg12[%c0_43, %c0_44, %c0_45] : memref<1x8x32xf32, #tpu.memory_space<vmem>>, vector<1x8x32xf32>
    %108 = vector.shape_cast %107 : vector<1x8x32xf32> to vector<8x32xf32>
    %109 = vector.shape_cast %106 : vector<8x32xf32> to vector<1x8x32xf32>
    tpu.vector_store %arg12[%c0_43, %c0_44, %c0_45], %109 {strides = array<i32>} : memref<1x8x32xf32, #tpu.memory_space<vmem>>, vector<1x8x32xf32>,
    return
  }
  func.func @transform_0(%arg0: i32) -> (i32, i32, i32) {
    %c0_i32 = arith.constant 0 : i32
    %c0_i32_0 = arith.constant 0 : i32
    %c0_i32_1 = arith.constant 0 : i32
    return %arg0, %c0_i32, %c0_i32_0 : i32, i32, i32
  }
  func.func @transform_1(%arg0: i32) -> (i32, i32, i32) {
    %c0_i32 = arith.constant 0 : i32
    %c0_i32_0 = arith.constant 0 : i32
    %c0_i32_1 = arith.constant 0 : i32
    return %arg0, %c0_i32, %c0_i32_0 : i32, i32, i32
  }
  func.func @transform_2(%arg0: i32) -> (i32, i32, i32) {
    %c0_i32 = arith.constant 0 : i32
    %c0_i32_0 = arith.constant 0 : i32
    %c0_i32_1 = arith.constant 0 : i32
    return %arg0, %c0_i32, %c0_i32_0 : i32, i32, i32
  }
  func.func @transform_3(%arg0: i32) -> (i32, i32) {
    %c0_i32 = arith.constant 0 : i32
    %c0_i32_0 = arith.constant 0 : i32
    %c0_i32_1 = arith.constant 0 : i32
    return %c0_i32, %c0_i32_0 : i32, i32
  }
  func.func @transform_4(%arg0: i32) -> (i32, i32) {
    %c0_i32 = arith.constant 0 : i32
    %c0_i32_0 = arith.constant 0 : i32
    %c0_i32_1 = arith.constant 0 : i32
    return %c0_i32, %c0_i32_0 : i32, i32
  }
  func.func @transform_5(%arg0: i32) -> (i32, i32) {
    %c0_i32 = arith.constant 0 : i32
    %c0_i32_0 = arith.constant 0 : i32
    %c0_i32_1 = arith.constant 0 : i32
    return %c0_i32, %c0_i32_0 : i32, i32
  }
  func.func @transform_6(%arg0: i32) -> (i32, i32) {
    %c0_i32 = arith.constant 0 : i32
    %c0_i32_0 = arith.constant 0 : i32
    %c0_i32_1 = arith.constant 0 : i32
    return %c0_i32, %c0_i32_0 : i32, i32
  }
  func.func @transform_7(%arg0: i32) -> (i32, i32) {
    %c0_i32 = arith.constant 0 : i32
    %c0_i32_0 = arith.constant 0 : i32
    %c0_i32_1 = arith.constant 0 : i32
    return %c0_i32, %c0_i32_0 : i32, i32
  }
  func.func @transform_8(%arg0: i32) -> (i32, i32) {
    %c0_i32 = arith.constant 0 : i32
    %c0_i32_0 = arith.constant 0 : i32
    %c0_i32_1 = arith.constant 0 : i32
    return %c0_i32, %c0_i32_0 : i32, i32
  }
  func.func @transform_9(%arg0: i32) -> (i32, i32) {
    %c0_i32 = arith.constant 0 : i32
    %c0_i32_0 = arith.constant 0 : i32
    %c0_i32_1 = arith.constant 0 : i32
    return %c0_i32, %c0_i32_0 : i32, i32
  }
  func.func @transform_10(%arg0: i32) -> (i32, i32) {
    %c0_i32 = arith.constant 0 : i32
    %c0_i32_0 = arith.constant 0 : i32
    %c0_i32_1 = arith.constant 0 : i32
    return %c0_i32, %c0_i32_0 : i32, i32
  }
  func.func @transform_11(%arg0: i32) -> (i32, i32, i32) {
    %c0_i32 = arith.constant 0 : i32
    %c0_i32_0 = arith.constant 0 : i32
    %c0_i32_1 = arith.constant 0 : i32
    return %arg0, %c0_i32, %c0_i32_0 : i32, i32, i32
  }
}

</mosaic_0001>

<bundles_post_ra>
// kernel: tpu_custom_call.1
= control target key start
LH: loop header
LB: loop body
LE: loop exit
PB: predicated region body
PF: predicated region fallthrough
CT: control target
= control target key end

     0   :  { %s2865_s0 = inlined_call_operand.hbm [shape: bf16[4,8,32], index: 0, kind: input, shape index: {}]   ;;  %s2866_s1 = inlined_call_operand.hbm [shape: bf16[4,8,32], index: 1, kind: input, shape index: {}]   ;;  %s2867_s2 = inlined_call_operand.hbm [shape: bf16[4,8,32], index: 2, kind: input, shape index: {}]   ;;  %s2868_s3 = inlined_call_operand.hbm [shape: bf16[32,32], index: 3, kind: input, shape index: {}]   ;;  %s2869_s4 = inlined_call_operand.hbm [shape: bf16[32,32], index: 4, kind: input, shape index: {}]   ;;  %s2870_s5 = inlined_call_operand.hbm [shape: bf16[32,32], index: 5, kind: input, shape index: {}]   ;;  %s2871_s6 = inlined_call_operand.hbm [shape: bf16[32,32], index: 6, kind: input, shape index: {}]   ;;  %s2872_s7 = inlined_call_operand.hbm [shape: f32[1,32], index: 7, kind: input, shape index: {}]   ;;  %s2873_s8 = inlined_call_operand.hbm [shape: f32[1,32], index: 8, kind: input, shape index: {}]   ;;  %s2874_s9 = inlined_call_operand.hbm [shape: f32[1,32], index: 9, kind: input, shape index: {}]   ;;  %s2875_s10 = inlined_call_operand.hbm [shape: f32[1,32], index: 10, kind: input, shape index: {}]   ;;  %s2876_s11 = inlined_call_operand.hbm [shape: f32[4,8,32], index: 11, kind: output, shape index: {}]  }
   0x1   :  { %2904 = sst [smem:[#allocation35_spill]] %s2866_s1 }
   0x2   :  { %2905 = sst [smem:[#allocation36_spill]] %s2867_s2 }
   0x3   :  { %2906 = sst [smem:[#allocation37_spill]] %s2868_s3 }
   0x4   :  { %2907 = sst [smem:[#allocation38_spill]] %s2870_s5 }
   0x5   :  { %2908 = sst [smem:[#allocation39_spill]] %s2872_s7 }
   0x6   :  { %2909 = sst [smem:[#allocation40_spill]] %s2874_s9 }
   0x7   :  { %2910 = sst [smem:[#allocation41_spill]] %s2876_s11 }
   0x8   :  { %16 = vsyncpa [#allocation3], 0 }
   0x9   :  { %18 = vsyncpa [#allocation3 + $0x1], 0 }
   0xa   :  { %19 = vsyncpa [#allocation6], 0 }
   0xb   :  { %21 = vsyncpa [#allocation6 + $0x1], 0 }
   0xc   :  { %22 = vsyncpa [#allocation9], 0 }
   0xd   :  { %23 = vsyncpa [#allocation12], 0 }
   0xe   :  { %24 = vsyncpa [#allocation15], 0 }
   0xf   :  { %25 = vsyncpa [#allocation18], 0 }
  0x10   :  { %26 = vsyncpa [#allocation4], 0 }
  0x11   :  { %28 = vsyncpa [#allocation4 + $0x1], 0  ;;  %s2338_s17 = smov 0   ;;  %s2340_s18 = smov 0  }
  0x12   :  { %s2342_s19 = smov 0   ;;  %s2344_s20 = smov 0  }
  0x13 LB: > { %2911 = sst [smem:[#allocation28_spill]] %s2242_s17  ;;  %s2256_s21 = smov [#allocation8]   ;;  %s2254_s20 = sphi %s2344_s20, %s2959_s20   ;;  %s2250_s19 = sphi %s2342_s19, %s2963_s19   ;;  %s2246_s18 = sphi %s2340_s18, %s2962_s18   ;;  %s2242_s17 = sphi %s2338_s17, %s2961_s17  }
  0x14   : > { %2912 = sst [smem:[#allocation29_spill]] %s2254_s20  ;;  %s323_s22 = sshll.u32 %s2256_s21, 4  ;;  %s2364_s22 = int_to_ptr.vmem [resolvable:$true] %s323_s22 }
  0x15   : > { %s2359_s23 = sadd.s32 4294967295, %s2254_s20   ;;  %p1518_p0 = scmp.ge.s32.totalorder %s2254_s20, 1 }
  0x16   : > { %p2880_p1 = scmp.eq.s32.totalorder %s2359_s23, 0  ;;  %p311_p2 = scmp.lt.s32.totalorder %s2254_s20, 5 }
  0x17   : > { %s2257_s25 = smov [#allocation11]   ;;  %s2258_s28 = smov [#allocation14]  }
  0x18   : > { %p2366_p3 = pnand %p1518_p0, %p311_p2  ;;  %s349_s26 = sshll.u32 %s2257_s25, 4  ;;  %s2378_s26 = int_to_ptr.vmem [resolvable:$true] %s349_s26 }
  0x19   : > { %s376_s29 = sshll.u32 %s2258_s28, 4  ;;  %s2916_s3 = sld [smem:[#allocation37_spill]]  ;;  %s2380_s29 = int_to_ptr.vmem [resolvable:$true] %s376_s29 }
  0x1a   : > { %s2913_s24 = scalar_select %p2366_p3, 1, 0 }
  0x1b   : > { %p1723_p4 = pneg %p2366_p3 }
  0x1c   : > { %2914 = sst [smem:[#allocation30_spill]] %s2913_s24 }
  0x1d   : > { %p2374_p5 = pnand %p1723_p4, %p2880_p1 }
  0x1f   : > { %s2915_s27 = scalar_select %p2374_p5, 1, 0 }
  0x20   : > { %s1854_s13 = scalar_lea.hbm %s2916_s3, 256  ;;  %p2390_p7 = pneg %p2374_p5 }
  0x21   : > { %p1855_p6 = scmp.ne.s32.totalorder %s2916_s3, %s1854_s13  ;;  %p1861_p10 = scmp.lt.u32.totalorder %s1854_s13, %s2916_s3 }
  0x22   : > { %s2917_s16 = scalar_select %p2390_p7, 1, 0 }
  0x23   : > { %p1857_p8 = pnand %p2390_p7, %p1855_p6 }
  0x25   : > { %p1858_p9 = pneg %p1857_p8 }
  0x27   : > { %p1863_p11 = pnand %p1861_p10, %p1858_p9 }
  0x29   : > { %1866 = shalt.err (!%p1863_p11)
}
  0x2a   : > { %s1867_s28 = scalar_lea.vmem %s2364_s22, 256  ;;  %p1875_p2 = scmp.lt.s32.totalorder %s2364_s22, %s2364_s22 }
  0x2b   : > { %p1868_p12 = scmp.ne.s32.totalorder %s2364_s22, %s1867_s28  ;;  %p1876_p4 = scmp.lt.s32.totalorder %s1867_s28, %s1867_s28 }
  0x2d   : > { %p1870_p13 = pnand %p1868_p12, %p2390_p7  ;;  %p1877_p6 = por %p1876_p4, %p1875_p2 }
  0x2f   : > { %p1871_p0 = pneg %p1870_p13 }
  0x31   : > { %p1878_p8 = pnand %p1877_p6, %p1871_p0 }
  0x33   : > { %1881 = shalt.err (!%p1878_p8)
}
  0x34   : > { %s2882_s30 = smov 64   ;;  %s2885_s12 = smov 4  }
  0x35   : > { %1726 = dma.hbm_to_vmem [thread:$0]  (!%p2374_p5), %s2916_s3, 256, %s2364_s22, [#allocation9], %s2882_s30, %s2882_s30, %s2885_s12  }
  0x36   : > { %s2918_s5 = sld [smem:[#allocation38_spill]] }
  0x3c   : > { %s1882_s25 = scalar_lea.hbm %s2918_s5, 256 }
  0x3d   : > { %p1883_p9 = scmp.ne.s32.totalorder %s2918_s5, %s1882_s25  ;;  %p1889_p12 = scmp.lt.u32.totalorder %s1882_s25, %s2918_s5 }
  0x3f   : > { %p1885_p10 = pnand %p1883_p9, %p2390_p7 }
  0x41   : > { %p1886_p11 = pneg %p1885_p10 }
  0x43   : > { %p1891_p13 = pnand %p1889_p12, %p1886_p11 }
  0x45   : > { %1894 = shalt.err (!%p1891_p13)
}
  0x46   : > { %s1895_s22 = scalar_lea.vmem %s2378_s26, 256  ;;  %p1903_p6 = scmp.lt.s32.totalorder %s2378_s26, %s2378_s26 }
  0x47   : > { %p1896_p0 = scmp.ne.s32.totalorder %s2378_s26, %s1895_s22  ;;  %p1904_p8 = scmp.lt.s32.totalorder %s1895_s22, %s1895_s22 }
  0x49   : > { %p1898_p2 = pnand %p1896_p0, %p2390_p7  ;;  %p1905_p9 = por %p1904_p8, %p1903_p6 }
  0x4b   : > { %p1899_p4 = pneg %p1898_p2 }
  0x4d   : > { %p1906_p10 = pnand %p1905_p9, %p1899_p4 }
  0x4f   : > { %1909 = shalt.err (!%p1906_p10)
}
  0x50   : > { %1732 = dma.hbm_to_vmem [thread:$0]  (!%p2374_p5), %s2918_s5, 256, %s2378_s26, [#allocation12], %s2882_s30, %s2882_s30, %s2885_s12  }
  0x51   : > { %s2919_s7 = sld [smem:[#allocation39_spill]] }
  0x57   : > { %s1910_s14 = scalar_lea.hbm %s2919_s7, 16 }
  0x58   : > { %p1911_p11 = scmp.ne.s32.totalorder %s2919_s7, %s1910_s14  ;;  %p1917_p0 = scmp.lt.u32.totalorder %s1910_s14, %s2919_s7 }
  0x5a   : > { %p1913_p12 = pnand %p1911_p11, %p2390_p7 }
  0x5c   : > { %p1914_p13 = pneg %p1913_p12 }
  0x5e   : > { %p1919_p2 = pnand %p1917_p0, %p1914_p13 }
  0x60   : > { %1922 = shalt.err (!%p1919_p2)
}
  0x61   : > { %s1923_s26 = scalar_lea.vmem %s2380_s29, 16  ;;  %s1930_s22 = scalar_lea.vmem %s2380_s29, 32 }
  0x62   : > { %p1924_p4 = scmp.ne.s32.totalorder %s2380_s29, %s1923_s26  ;;  %p1931_p9 = scmp.lt.s32.totalorder %s2380_s29, %s2380_s29 }
  0x63   : > { %p1932_p10 = scmp.lt.s32.totalorder %s1930_s22, %s1923_s26 }
  0x64   : > { %p1926_p6 = pnand %p1924_p4, %p2390_p7 }
  0x65   : > { %p1933_p11 = por %p1932_p10, %p1931_p9 }
  0x66   : > { %p1927_p8 = pneg %p1926_p6 }
  0x68   : > { %p1934_p12 = pnand %p1933_p11, %p1927_p8 }
  0x6a   : > { %1937 = shalt.err (!%p1934_p12)
}
  0x6b   : > { %1738 = dma.hbm_to_vmem [thread:$0]  (!%p2374_p5), %s2919_s7, 16, %s2380_s29, [#allocation15]  }
  0x6c   : > { %s2261_s24 = smov [#allocation17]   ;;  %s2920_s9 = sld [smem:[#allocation40_spill]] }
  0x6d   : > { %s398_s13 = sshll.u32 %s2261_s24, 4  ;;  %s399_s13 = int_to_ptr.vmem [resolvable:$true] %s398_s13 }
  0x72   : > { %s1938_s21 = scalar_lea.hbm %s2920_s9, 16 }
  0x73   : > { %p1939_p13 = scmp.ne.s32.totalorder %s2920_s9, %s1938_s21  ;;  %p1945_p4 = scmp.lt.u32.totalorder %s1938_s21, %s2920_s9 }
  0x75   : > { %p1941_p0 = pnand %p1939_p13, %p2390_p7 }
  0x77   : > { %p1942_p2 = pneg %p1941_p0 }
  0x79   : > { %p1947_p6 = pnand %p1945_p4, %p1942_p2 }
  0x7b   : > { %1950 = shalt.err (!%p1947_p6)
}
  0x7c   : > { %s1951_s29 = scalar_lea.vmem %s399_s13, 16  ;;  %s1958_s2 = scalar_lea.vmem %s399_s13, 32 }
  0x7d   : > { %p1952_p8 = scmp.ne.s32.totalorder %s399_s13, %s1951_s29  ;;  %p1959_p11 = scmp.lt.s32.totalorder %s399_s13, %s399_s13 }
  0x7e   : > { %p1960_p12 = scmp.lt.s32.totalorder %s1958_s2, %s1951_s29 }
  0x7f   : > { %p1954_p9 = pnand %p1952_p8, %p2390_p7 }
  0x80   : > { %p1961_p1 = por %p1960_p12, %p1959_p11 }
  0x81   : > { %p1955_p10 = pneg %p1954_p9 }
  0x83   : > { %p1962_p3 = pnand %p1961_p1, %p1955_p10 }
  0x85   : > { %1965 = shalt.err (!%p1962_p3)
}
  0x86   : > { %1744 = dma.hbm_to_vmem [thread:$0]  (!%p2374_p5), %s2920_s9, 16, %s399_s13, [#allocation18]  }
  0x87   : > { %s1517_s14 = sadd.s32 4294967294, %s2254_s20   ;;  %s2484_s15 = sadd.s32 1, %s2254_s20  }
  0x88   : > { %2921 = sst [smem:[#allocation31_spill]] %s2484_s15  ;;  %s38_s21 = ssub.s32 %s2254_s20, %s2484_s15 }
  0x89   : > { %s41_s25 = sadd.s32 1, %s2250_s19  ;;  %p39_p1 = scmp.eq.s32.totalorder %s38_s21, 0 }
  0x8a   : > { %p48_p3 = scmp.ne.s32.totalorder %s2250_s19, %s2246_s18  ;;  %p49_p13 = scmp.eq.s32.totalorder %s2254_s20, 0 }
  0x8b   : > { %p54_p0 = scmp.ne.s32.totalorder %s2246_s18, %s2242_s17  ;;  %p2923_p4 = scmp.eq.s32.totalorder %s2359_s23, 0 }
  0x8c   : > { %s2495_s28 = scalar_select %p39_p1, %s2250_s19, %s41_s25  }
  0x8d   : > { %p50_p2 = por %p49_p13, %p48_p3  ;;  %p2499_p6 = por %p2923_p4, %p54_p0 }
  0x8e   : > { %2922 = sst [smem:[#allocation32_spill]] %s2495_s28  ;;  %p298_p8 = scmp.eq.s32.totalorder %s2359_s23, 3 }
  0x8f   : > { %s2924_s26 = scalar_select %p2499_p6, 1, 0 }
  0x90   : > { %p304_p9 = scmp.eq.s32.totalorder %s1517_s14, 3  ;;  %p1770_p10 = scmp.lt.s32.totalorder %s2254_s20, 4 }
  0x91   : > { %s2884_s13 = sand.u32 1, %s2250_s19   ;;  %p2506_p11 = por %p298_p8, %p48_p3 }
  0x92   : > { %p2510_p12 = por %p304_p9, %p54_p0  ;;  %s2516_s2 = sshll.u32 %s2884_s13, 2 }
  0x93   : > { %s2925_s22 = scalar_select %p2506_p11, 1, 0 }
  0x94   : > { %s2927_s29 = scalar_select %p2510_p12, 1, 0 }
  0x95   : > { %2926 = sst [smem:[#allocation33_spill]] %s2925_s22  ;;  %s2519_s11 = sshll.u32 %s2254_s20, 6 }
  0x96   : > { %2928 = sst [smem:[#allocation34_spill]] %s2927_s29  ;;  %p2521_p1 = pnand %p1770_p10, %p50_p2 }
  0x97   : > { %s438_s14 = sand.u32 1, %s2254_s20   ;;  %s2930_s1 = sld [smem:[#allocation35_spill]] }
  0x98   : > { %s2929_s24 = scalar_select %p2521_p1, 1, 0 }
  0x99   : > { %s442_s13 = scalar_lea.vmem [#allocation5], %s2516_s2  ;;  %s2262_s3 = smov [#allocation10]  }
  0x9a   : > { %s449_s12 = sshll.u32 %s442_s13, 4  ;;  %s2535_s5 = sshll.u32 %s2262_s3, 4  ;;  %s2533_s12 = int_to_ptr.vmem [resolvable:$true] %s449_s12  ;;  %s337_s5 = int_to_ptr.vmem [resolvable:$true] %s2535_s5 }
  0x9b   : > { %s2537_s7 = scalar_lea.sflag [#allocation6], %s438_s14  ;;  %p2543_p13 = pneg %p2521_p1 }
  0x9d   : > { %s2530_s30 = scalar_lea.hbm %s2930_s1, %s2519_s11  ;;  %s1971_s28 = scalar_lea.hbm %s2930_s1, 256 }
  0x9e   : > { %s1966_s9 = scalar_lea.hbm %s2530_s30, 64  ;;  %p1972_p4 = scmp.lt.u32.totalorder %s2530_s30, %s2930_s1 }
  0x9f   : > { %p1967_p3 = scmp.ne.s32.totalorder %s2530_s30, %s1966_s9  ;;  %p1973_p8 = scmp.lt.u32.totalorder %s1971_s28, %s1966_s9 }
  0xa0   : > { %s2931_s21 = scalar_select %p2543_p13, 1, 0 }
  0xa1   : > { %p1969_p0 = pnand %p2543_p13, %p1967_p3  ;;  %p1974_p9 = por %p1973_p8, %p1972_p4 }
  0xa2   : > { %p1975_p10 = scmp.lt.u32.totalorder %s1966_s9, %s2530_s30 }
  0xa3   : > { %p1970_p2 = pneg %p1969_p0 }
  0xa4   : > { %p1976_p12 = por %p1975_p10, %p1974_p9 }
  0xa6   : > { %p1977_p11 = pnand %p1976_p12, %p1970_p2 }
  0xa8   : > { %1980 = shalt.err (!%p1977_p11)
}
  0xa9   : > { %s1981_s14 = scalar_lea.vmem %s2533_s12, 64  ;;  %s2263_s25 = smov [#allocation5]  }
  0xaa   : > { %p1982_p3 = scmp.ne.s32.totalorder %s2533_s12, %s1981_s14  ;;  %s1986_s13 = sshll.u32 %s2263_s25, 4  ;;  %s1987_s13 = int_to_ptr.vmem [resolvable:$false] %s1986_s13 }
  0xab   : > { %s1988_s15 = scalar_lea.vmem %s1987_s13, 128  ;;  %p1989_p5 = scmp.lt.s32.totalorder %s2533_s12, %s1987_s13 }
  0xac   : > { %p1984_p0 = pnand %p1982_p3, %p2543_p13  ;;  %p1990_p7 = scmp.lt.s32.totalorder %s1988_s15, %s1981_s14 }
  0xae   : > { %p1985_p6 = pneg %p1984_p0  ;;  %p1991_p4 = por %p1990_p7, %p1989_p5 }
  0xb0   : > { %p1992_p8 = pnand %p1991_p4, %p1985_p6 }
  0xb2   : > { %1995 = shalt.err (!%p1992_p8)
}
  0xb3   : > { %1754 = dma.hbm_to_vmem [thread:$0]  (!%p2521_p1), %s2530_s30, 64, %s2533_s12, %s2537_s7  }
  0xb4   : > { %s1996_s3 = scalar_lea.hbm %s2869_s4, 256  ;;  %p2932_p5 = scmp.ne.s32.totalorder %s2917_s16, 0 }
  0xb5   : > { %p1997_p11 = scmp.ne.s32.totalorder %s2869_s4, %s1996_s3  ;;  %p2003_p12 = scmp.lt.u32.totalorder %s1996_s3, %s2869_s4 }
  0xb7   : > { %p1999_p7 = pnand %p1997_p11, %p2932_p5 }
  0xb9   : > { %p2000_p6 = pneg %p1999_p7 }
  0xbb   : > { %p2005_p2 = pnand %p2003_p12, %p2000_p6 }
  0xbd   : > { %2008 = shalt.err (!%p2005_p2)
}
  0xbe   : > { %s2009_s15 = scalar_lea.vmem %s337_s5, 256  ;;  %p2017_p0 = scmp.lt.s32.totalorder %s337_s5, %s337_s5 }
  0xbf   : > { %p2010_p9 = scmp.ne.s32.totalorder %s337_s5, %s2009_s15  ;;  %p2018_p4 = scmp.lt.s32.totalorder %s2009_s15, %s2009_s15 }
  0xc1   : > { %p2012_p10 = pnand %p2010_p9, %p2932_p5  ;;  %p2019_p8 = por %p2018_p4, %p2017_p0 }
  0xc3   : > { %p2013_p3 = pneg %p2012_p10 }
  0xc5   : > { %p2020_p1 = pnand %p2019_p8, %p2013_p3 }
  0xc7   : > { %2023 = shalt.err (!%p2020_p1)
}
  0xc8   : > { %p2933_p11 = scmp.ne.s32.totalorder %s2915_s27, 0  ;;  %s2934_s1 = smov 4  }
  0xc9   : > { %s2935_s30 = smov 64   ;;  %s2264_s28 = smov [#allocation13]  }
  0xca   : > { %1729 = dma.hbm_to_vmem [thread:$0]  (!%p2933_p11), %s2869_s4, 256, %s337_s5, [#allocation9], %s2935_s30, %s2935_s30, %s2934_s1  }
  0xcb   : > { %s362_s3 = sshll.u32 %s2264_s28, 4  ;;  %s2265_s25 = smov [#allocation16]   ;;  %s363_s3 = int_to_ptr.vmem [resolvable:$true] %s362_s3 }
  0xcc   : > { %s387_s14 = sshll.u32 %s2265_s25, 4  ;;  %s2024_s29 = scalar_lea.hbm %s2871_s6, 256  ;;  %s388_s14 = int_to_ptr.vmem [resolvable:$true] %s387_s14 }
  0xcd   : > { %p2025_p1 = scmp.ne.s32.totalorder %s2871_s6, %s2024_s29  ;;  %p2031_p12 = scmp.lt.u32.totalorder %s2024_s29, %s2871_s6 }
  0xcf   : > { %p2027_p7 = pnand %p2025_p1, %p2932_p5 }
  0xd1   : > { %p2028_p6 = pneg %p2027_p7 }
  0xd3   : > { %p2033_p2 = pnand %p2031_p12, %p2028_p6 }
  0xd5   : > { %2036 = shalt.err (!%p2033_p2)
}
  0xd6   : > { %s2037_s5 = scalar_lea.vmem %s363_s3, 256  ;;  %p2045_p0 = scmp.lt.s32.totalorder %s363_s3, %s363_s3 }
  0xd7   : > { %p2038_p9 = scmp.ne.s32.totalorder %s363_s3, %s2037_s5  ;;  %p2046_p4 = scmp.lt.s32.totalorder %s2037_s5, %s2037_s5 }
  0xd9   : > { %p2040_p10 = pnand %p2038_p9, %p2932_p5  ;;  %p2047_p8 = por %p2046_p4, %p2045_p0 }
  0xdb   : > { %p2041_p3 = pneg %p2040_p10 }
  0xdd   : > { %p2048_p13 = pnand %p2047_p8, %p2041_p3 }
  0xdf   : > { %2051 = shalt.err (!%p2048_p13)
}
  0xe0   : > { %1735 = dma.hbm_to_vmem [thread:$0]  (!%p2933_p11), %s2871_s6, 256, %s363_s3, [#allocation12], %s2935_s30, %s2935_s30, %s2934_s1  }
  0xe1   : > { %s2052_s9 = scalar_lea.hbm %s2873_s8, 16 }
  0xe2   : > { %p2053_p1 = scmp.ne.s32.totalorder %s2873_s8, %s2052_s9  ;;  %p2059_p6 = scmp.lt.u32.totalorder %s2052_s9, %s2873_s8 }
  0xe4   : > { %p2055_p13 = pnand %p2053_p1, %p2932_p5 }
  0xe6   : > { %p2056_p7 = pneg %p2055_p13 }
  0xe8   : > { %p2061_p12 = pnand %p2059_p6, %p2056_p7 }
  0xea   : > { %2064 = shalt.err (!%p2061_p12)
}
  0xeb   : > { %s2065_s12 = scalar_lea.vmem %s388_s14, 16  ;;  %s2072_s1 = scalar_lea.vmem %s388_s14, 32 }
  0xec   : > { %p2066_p2 = scmp.ne.s32.totalorder %s388_s14, %s2065_s12  ;;  %p2073_p3 = scmp.lt.s32.totalorder %s388_s14, %s388_s14 }
  0xed   : > { %p2074_p0 = scmp.lt.s32.totalorder %s2072_s1, %s2065_s12 }
  0xee   : > { %p2068_p9 = pnand %p2066_p2, %p2932_p5 }
  0xef   : > { %p2075_p4 = por %p2074_p0, %p2073_p3 }
  0xf0   : > { %p2069_p10 = pneg %p2068_p9 }
  0xf2   : > { %p2076_p8 = pnand %p2075_p4, %p2069_p10 }
  0xf4   : > { %2079 = shalt.err (!%p2076_p8)
}
  0xf5   : > { %1741 = dma.hbm_to_vmem [thread:$0]  (!%p2933_p11), %s2873_s8, 16, %s388_s14, [#allocation15]  }
  0xf6   : > { %s2266_s5 = smov [#allocation19]   ;;  %s2080_s29 = scalar_lea.hbm %s2875_s10, 16 }
  0xf7   : > { %s409_s17 = sshll.u32 %s2266_s5, 4  ;;  %p2081_p1 = scmp.ne.s32.totalorder %s2875_s10, %s2080_s29  ;;  %s410_s17 = int_to_ptr.vmem [resolvable:$true] %s409_s17 }
  0xf8   : > { %p2087_p6 = scmp.lt.u32.totalorder %s2080_s29, %s2875_s10 }
  0xf9   : > { %p2083_p13 = pnand %p2081_p1, %p2932_p5 }
  0xfb   : > { %p2084_p7 = pneg %p2083_p13 }
  0xfd   : > { %p2089_p12 = pnand %p2087_p6, %p2084_p7 }
  0xff   : > { %2092 = shalt.err (!%p2089_p12)
}
 0x100   : > { %s2093_s14 = scalar_lea.vmem %s410_s17, 16  ;;  %s2100_s15 = scalar_lea.vmem %s410_s17, 32 }
 0x101   : > { %p2094_p2 = scmp.ne.s32.totalorder %s410_s17, %s2093_s14  ;;  %p2101_p3 = scmp.lt.s32.totalorder %s410_s17, %s410_s17 }
 0x102   : > { %p2102_p0 = scmp.lt.s32.totalorder %s2100_s15, %s2093_s14 }
 0x103   : > { %p2096_p9 = pnand %p2094_p2, %p2932_p5 }
 0x104   : > { %p2103_p4 = por %p2102_p0, %p2101_p3 }
 0x105   : > { %p2097_p10 = pneg %p2096_p9 }
 0x107   : > { %p2104_p8 = pnand %p2103_p4, %p2097_p10 }
 0x109   : > { %2107 = shalt.err (!%p2104_p8)
}
 0x10a   : > { %1747 = dma.hbm_to_vmem [thread:$0]  (!%p2933_p11), %s2875_s10, 16, %s410_s17, [#allocation18]  }
 0x10b   : > { %s2650_s3 = scalar_lea.hbm %s2865_s0, %s2519_s11  ;;  %s424_s5 = scalar_lea.vmem [#allocation2], %s2516_s2 }
 0x10c   : > { %s431_s20 = sshll.u32 %s424_s5, 4  ;;  %s2936_s27 = sand.u32 1, %s2250_s19   ;;  %s432_s20 = int_to_ptr.vmem [resolvable:$true] %s431_s20 }
 0x10d   : > { %s421_s22 = scalar_lea.sflag [#allocation3], %s2936_s27  ;;  %s2108_s29 = scalar_lea.hbm %s2650_s3, 64 }
 0x10e   : > { %p2109_p5 = scmp.ne.s32.totalorder %s2650_s3, %s2108_s29  ;;  %p2937_p1 = scmp.ne.s32.totalorder %s2931_s21, 0 }
 0x10f   : > { %s2113_s28 = scalar_lea.hbm %s2865_s0, 256  ;;  %p2114_p11 = scmp.lt.u32.totalorder %s2650_s3, %s2865_s0 }
 0x110   : > { %p2111_p13 = pnand %p2109_p5, %p2937_p1  ;;  %p2115_p6 = scmp.lt.u32.totalorder %s2113_s28, %s2108_s29 }
 0x111   : > { %p2117_p2 = scmp.lt.u32.totalorder %s2108_s29, %s2650_s3 }
 0x112   : > { %p2112_p7 = pneg %p2111_p13  ;;  %p2116_p12 = por %p2115_p6, %p2114_p11 }
 0x114   : > { %p2118_p9 = por %p2117_p2, %p2116_p12 }
 0x116   : > { %p2119_p10 = pnand %p2118_p9, %p2112_p7 }
 0x118   : > { %2122 = shalt.err (!%p2119_p10)
}
 0x119   : > { %s2123_s14 = scalar_lea.vmem %s432_s20, 64  ;;  %s2267_s15 = smov [#allocation2]  }
 0x11a   : > { %p2124_p3 = scmp.ne.s32.totalorder %s432_s20, %s2123_s14  ;;  %s2128_s12 = sshll.u32 %s2267_s15, 4  ;;  %s2129_s12 = int_to_ptr.vmem [resolvable:$false] %s2128_s12 }
 0x11b   : > { %s2130_s1 = scalar_lea.vmem %s2129_s12, 128  ;;  %p2131_p8 = scmp.lt.s32.totalorder %s432_s20, %s2129_s12 }
 0x11c   : > { %p2126_p0 = pnand %p2124_p3, %p2937_p1  ;;  %p2132_p5 = scmp.lt.s32.totalorder %s2130_s1, %s2123_s14 }
 0x11e   : > { %p2127_p4 = pneg %p2126_p0  ;;  %p2133_p13 = por %p2132_p5, %p2131_p8 }
 0x120   : > { %p2134_p6 = pnand %p2133_p13, %p2127_p4 }
 0x122   : > { %2137 = shalt.err (!%p2134_p6)
}
 0x123   : > { %p2938_p11 = scmp.ne.s32.totalorder %s2929_s24, 0  ;;  %s2939_s5 = sld [smem:[#allocation36_spill]] }
 0x124   : > { %s460_s29 = scalar_lea.vmem [#allocation7], %s2516_s2 }
 0x125   : > { %1751 = dma.hbm_to_vmem [thread:$0]  (!%p2938_p11), %s2650_s3, 64, %s432_s20, %s421_s22  }
 0x126   : > { %s467_s17 = sshll.u32 %s460_s29, 4  ;;  %s468_s17 = int_to_ptr.vmem [resolvable:$true] %s467_s17 }
 0x129   : > { %s2676_s27 = scalar_lea.hbm %s2939_s5, %s2519_s11  ;;  %s2143_s3 = scalar_lea.hbm %s2939_s5, 256 }
 0x12a   : > { %s2138_s9 = scalar_lea.hbm %s2676_s27, 64  ;;  %p2144_p9 = scmp.lt.u32.totalorder %s2676_s27, %s2939_s5 }
 0x12b   : > { %p2139_p7 = scmp.ne.s32.totalorder %s2676_s27, %s2138_s9  ;;  %p2145_p10 = scmp.lt.u32.totalorder %s2143_s3, %s2138_s9 }
 0x12c   : > { %p2147_p0 = scmp.lt.u32.totalorder %s2138_s9, %s2676_s27 }
 0x12d   : > { %p2141_p12 = pnand %p2139_p7, %p2937_p1  ;;  %p2146_p3 = por %p2145_p10, %p2144_p9 }
 0x12f   : > { %p2142_p2 = pneg %p2141_p12  ;;  %p2148_p4 = por %p2147_p0, %p2146_p3 }
 0x131   : > { %p2149_p8 = pnand %p2148_p4, %p2142_p2 }
 0x133   : > { %2152 = shalt.err (!%p2149_p8)
}
 0x134   : > { %s2153_s2 = scalar_lea.vmem %s468_s17, 64  ;;  %s2268_s11 = smov [#allocation7]  }
 0x135   : > { %p2154_p5 = scmp.ne.s32.totalorder %s468_s17, %s2153_s2  ;;  %s2158_s13 = sshll.u32 %s2268_s11, 4  ;;  %s2159_s13 = int_to_ptr.vmem [resolvable:$false] %s2158_s13 }
 0x136   : > { %s2160_s14 = scalar_lea.vmem %s2159_s13, 128  ;;  %p2161_p7 = scmp.lt.s32.totalorder %s468_s17, %s2159_s13 }
 0x137   : > { %p2156_p13 = pnand %p2154_p5, %p2937_p1  ;;  %p2162_p12 = scmp.lt.s32.totalorder %s2160_s14, %s2153_s2 }
 0x139   : > { %p2157_p6 = pneg %p2156_p13  ;;  %p2163_p11 = por %p2162_p12, %p2161_p7 }
 0x13b   : > { %p2164_p9 = pnand %p2163_p11, %p2157_p6 }
 0x13d   : > { %2167 = shalt.err (!%p2164_p9)
}
 0x13e   : > { %p2940_p10 = scmp.ne.s32.totalorder %s2929_s24, 0  ;;  %s2941_s15 = sld [smem:[#allocation30_spill]] }
 0x140   : > { %1757 = dma.hbm_to_vmem [thread:$0]  (!%p2940_p10), %s2676_s27, 64, %s468_s17, %s2537_s7  }
 0x144   : > { %p2942_p2 = scmp.ne.s32.totalorder %s2941_s15, 0 }
 0x145   : > { %s2700_s21 = sand.u32 (!%p2942_p2), 1, %s2246_s18   ;;  %p2943_p1 = scmp.ne.s32.totalorder (!%p2942_p2), %s2924_s26, 0 }
 0x146   : > { %476 = sbr.rel (%p2942_p2) target bundleno = 1802 (0x70a), region = 64  ;;  %s2703_s12 = sshll.u32 (!%p2942_p2), %s2700_s21, 2 }
 0x147   : > { %s479_s1 = scalar_lea.sflag (!%p2942_p2), [#allocation3], %s2700_s21  ;;  %s482_s30 = scalar_lea.vmem (!%p2942_p2), [#allocation2], %s2703_s12 }
 0x14d   : > { %2213 = dma.done.wait (%p2943_p1), %s479_s1, 64  }
 0x14e   : > { %2215 = vsyncadd (%p2943_p1), %s479_s1, 4294967232  ;;  %s487_s7 = sand.u32 1, %s2359_s23   ;;  %s491_s16 = scalar_lea.vmem [#allocation5], %s2703_s12 }
 0x14f   : > { %s488_s24 = scalar_lea.sflag [#allocation6], %s487_s7 }
 0x150   : > { %2217 = dma.done.wait (%p2943_p1), %s488_s24, 128  }
 0x151   : > { %2219 = vsyncadd (%p2943_p1), %s488_s24, 4294967168  ;;  %s500_s27 = scalar_lea.vmem [#allocation7], %s2703_s12  ;;  %p2944_p11 = scmp.eq.s32.totalorder %s2359_s23, 0 }
 0x153   : > { %2221 = dma.done.wait (%p2944_p11), [#allocation9], 512   ;;  %p2945_p3 = pmov %p2944_p11 }
 0x155   : > { %2223 = vsyncadd (%p2945_p3), [#allocation9], 4294966784  ;;  %p2946_p0 = pmov %p2945_p3 }
 0x157   : > { %2225 = dma.done.wait (%p2946_p0), [#allocation12], 512   ;;  %p2947_p4 = pmov %p2946_p0 }
 0x158   : > { %p2948_p8 = pmov %p2946_p0 }
 0x159   : > { %2227 = vsyncadd (%p2947_p4), [#allocation12], 4294966784 }
 0x15a   : > { %2229 = dma.done.wait (%p2948_p8), [#allocation15], 32   ;;  %p2949_p5 = pmov %p2946_p0 }
 0x15b   : > { %p2950_p13 = pmov %p2946_p0 }
 0x15c   : > { %2231 = vsyncadd (%p2949_p5), [#allocation15], 4294967264 }
 0x15d   : > { %2233 = dma.done.wait (%p2950_p13), [#allocation18], 32   ;;  %p2951_p6 = pmov %p2946_p0 }
 0x15e   : > { %v2269_v0 = vmov 0.0   ;;  %vm2270_vm0 = vmmov 0   ;;  %v1830_v1 = vld [vmem:[#allocation10] sm:$0xff]   ;;  %v1831_v2 = vld [vmem:[#allocation8] sm:$0xff]   ;;  %v1832_v3 = vld [vmem:[#allocation10 + $0x8] sm:$0xff]   ;;  %vm608_vm1 = vcmask 261120  }
 0x15f   : > { %2235 = vsyncadd (%p2951_p6), [#allocation18], 4294967264  ;;  %1611 = vmatprep.subr.bf16.mxu1 %v2269_v0  ;;  %1603 = vmatprep.subr.bf16.mxu0 %v2269_v0  ;;  %v583_v4 = vld [vmem:[%s491_s16] sm:$0xf]  ;;  %v1833_v5 = vld [vmem:[#allocation8 + $0x8] sm:$0xff]   ;;  %vm787_vm2 = vcmask 64512  }
 0x160   : > { %1615 = vmatprep.mubr.msk.bf16.mxu1 %vm2270_vm0, %v2269_v0  ;;  %1607 = vmatprep.mubr.msk.bf16.mxu0 %vm2270_vm0, %v2269_v0  ;;  %v582_v6 = vld [vmem:[%s482_s30] sm:$0xf]  ;;  %v1551_v7 = vld [vmem:[#allocation16] ss:$0 sm:$0xff]  ;;  %v1547_v8 = vld [vmem:[#allocation14] ss:$0 sm:$0xff] }
 0x161   : > { %1612 = vmatpush3.bf16.msra.mxu1 %v1830_v1  ;;  %1604 = vmatpush3.bf16.msra.mxu0 %v1831_v2  ;;  %s2271_s26 = smov 112   ;;  %s2272_s29 = smov 120   ;;  %v1834_v22 = vld [vmem:[#allocation11] sm:$0xff]   ;;  %v1835_v23 = vld [vmem:[#allocation11 + $0x8] sm:$0xff]   ;;  %v584_v24 = vld [vmem:[%s500_s27] sm:$0xf] }
 0x162   : > { %1613 = vmatprep.subr.bf16.mxu1 %v2269_v0  ;;  %1605 = vmatprep.subr.bf16.mxu0 %v2269_v0  ;;  %s2273_s17 = smov 104   ;;  %v1555_v39 = vld [vmem:[#allocation17] ss:$0 sm:$0xff]  ;;  %vm849_vm3 = vcmask 1043456   ;;  %s2274_s9 = smov 8   ;;  %vm1242_vm4 = vcmask 130048  }
 0x163   : > { %s2275_s28 = smov 16   ;;  %s2276_s25 = smov 24   ;;  %vm1245_vm5 = vcmask 195584  }
 0x164   : > { %s1546_s3 = sshll.u32 %s2700_s21, 3  ;;  %s2952_s20 = sld [smem:[#allocation33_spill]] }
 0x165   : > { %1614 = vmatpush3.bf16.msra.mxu1 %v1832_v3  ;;  %1606 = vmatpush3.bf16.msra.mxu0 %v1833_v5  ;;  %s1572_s22 = sshll.u32 %s2359_s23, 7  ;;  %s580_s2 = scalar_lea.vmem [#allocation20], %s1546_s3 }
 0x166   : > { %1627 = vmatprep.subr.bf16.mxu1 %v2269_v0  ;;  %1619 = vmatprep.subr.bf16.mxu0 %v2269_v0  ;;  %s1328_s11 = sshll.u32 %s580_s2, 4  ;;  %s2953_s15 = sld [smem:[#allocation41_spill]]  ;;  %s2823_s11 = int_to_ptr.vmem [resolvable:$true] %s1328_s11 }
 0x167   : > { %s1315_s23 = scalar_lea.sflag [#allocation4], %s2700_s21  ;;  %s2168_s1 = scalar_lea.vmem %s2823_s11, 128 }
 0x168   : > { %1616 = vmatmul.mubr.msk.bf16.vlgmr.msra.gmra.mrb[0].mxu1 %vm608_vm1, %v583_v4  ;;  %1608 = vmatmul.mubr.msk.bf16.vlgmr.msra.gmra.mrb[0].mxu0 %vm608_vm1, %v582_v6  ;;  %p2169_p7 = scmp.ne.s32.totalorder %s2823_s11, %s2168_s1  ;;  %s2277_s30 = smov [#allocation20]  }
 0x169   : > { %1629 = vmatprep.mubr.msk.bf16.mxu1 %vm2270_vm0, %v2269_v0  ;;  %1623 = vmatprep.mubr.msk.bf16.mxu0 %vm2270_vm0, %v2269_v0  ;;  %s2172_s7 = sshll.u32 %s2277_s30, 4  ;;  %s2173_s7 = int_to_ptr.vmem [resolvable:$false] %s2172_s7 }
 0x16a   : > { %1620 = vmatpush3.bf16.msra.mxu0 %v1834_v22  ;;  %p2954_p12 = scmp.ne.s32.totalorder %s2952_s20, 0  ;;  %s2174_s24 = scalar_lea.vmem %s2173_s7, 256 }
 0x16b   : > { %1621 = vmatprep.subr.bf16.mxu0 %v2269_v0  ;;  %p2175_p2 = scmp.lt.s32.totalorder %s2823_s11, %s2173_s7  ;;  %p2176_p1 = scmp.lt.s32.totalorder %s2174_s24, %s2168_s1 }
 0x16c   : > { %s2821_s12 = scalar_lea.hbm %s2953_s15, %s1572_s22  ;;  %p2170_p9 = pnand %p2169_p7, %p2954_p12 }
 0x16d   : > { %p2177_p11 = por %p2176_p1, %p2175_p2 }
 0x16e   : > { %1622 = vmatpush3.bf16.msra.mxu0 %v1835_v23  ;;  %p2171_p10 = pneg %p2170_p9 }
 0x16f   : > { %1633 = vmatprep.subr.bf16.mxu0 %v2269_v0 }
 0x170   : > { %p2178_p3 = pnand %p2177_p11, %p2171_p10 }
 0x171   : > { %1624 = vmatmul.mubr.msk.bf16.vlgmr.msra.gmra.mrb[4].mxu0 %vm608_vm1, %v584_v24 }
 0x172   : > { %1635 = vmatprep.mubr.msk.bf16.mxu0 %vm2270_vm0, %v2269_v0 }
 0x23b   : > { %v712_v9 = vpop.f32.mrb[0].mxu1  ;;  %v646_v12 = vpop.f32.mrb[0].mxu0 }
 0x23c   : > { %v713_v10 = vadd.f32 %v1551_v7, %v712_v9  ;;  %v1617_v11 = vpop.f32.mrb[1].mxu1  ;;  %v647_v14 = vadd.f32 %v1547_v8, %v646_v12  ;;  %v1609_v15 = vpop.f32.mrb[1].mxu0 }
 0x23d   : > { %v715_v13 = vpop.f32.mrb[2].mxu1  ;;  %v649_v18 = vpop.f32.mrb[2].mxu0 }
 0x23e   : > { %v785_v16 = vpack.c.bf16 %v713_v10, %v713_v10  ;;  %v1618_v17 = vpop.f32.mrb[3].mxu1  ;;  %v1610_v19 = vpop.f32.mrb[3].mxu0  ;;  %v784_v20 = vpack.c.bf16 %v647_v14, %v647_v14 }
 0x240   : > { %1010 = vrot.lane.b32.xlu1 %v785_v16, %s2271_s26  ;;  %898 = vrot.lane.b32.xlu0 %v785_v16, %s2272_s29  ;;  %v792_v21 = vsel %vm787_vm2, %v785_v16, 0 }
 0x241   : > { %1628 = vmatpush3.bf16.xpose.msra.mxu1 %v792_v21 }
 0x242   : > { %1639 = vmatprep.subr.bf16.mxu1 %v2269_v0 }
 0x244   : > { %1008 = vrot.lane.b32.xlu1 %v784_v20, %s2271_s26  ;;  %895 = vrot.lane.b32.xlu0 %v784_v20, %s2272_s29  ;;  %v778_v40 = vpop.f32.mrb[4].mxu0 }
 0x245   : > { %v779_v41 = vadd.f32 %v1555_v39, %v778_v40  ;;  %v1625_v42 = vpop.f32.mrb[5].mxu0 }
 0x246   : > { %v781_v43 = vpop.f32.mrb[6].mxu0 }
 0x247   : > { %v786_v44 = vpack.c.bf16 %v779_v41, %v779_v41  ;;  %v1626_v45 = vpop.f32.mrb[7].mxu0 }
 0x248   : > { %1119 = vrot.lane.b32.xlu1 %v784_v20, %s2273_s17  ;;  %1121 = vrot.lane.b32.xlu0 %v785_v16, %s2273_s17  ;;  %v1836_v45 = vld [vmem:[#allocation13] sm:$0xff]  }
 0x249   : > { %1630 = vmatmul.mubr.msk.bf16.vlgmr.msra.gmra.mrb[4].mxu1 %vm787_vm2, %v784_v20  ;;  %v851_v46 = vsel %vm849_vm3, %v786_v44, 0 }
 0x24a   : > { %1641 = vmatprep.mubr.msk.bf16.mxu1 %vm2270_vm0, %v2269_v0  ;;  %1634 = vmatpush3.bf16.msra.mxu0 %v851_v46 }
 0x24b   : > { %1645 = vmatprep.subr.bf16.mxu0 %v2269_v0 }
 0x2b2   : > { %v899_v25 = vpop.permute.xlu0 %898  ;;  %v1011_v27 = vpop.permute.xlu1 %1010 }
 0x2b3   : > { %v904_v26 = vsel %vm787_vm2, %v899_v25, 0  ;;  %v1016_v29 = vsel %vm787_vm2, %v1011_v27, 0 }
 0x2b4   : > { %1640 = vmatpush3.bf16.xpose.msra.mxu1 %v904_v26 }
 0x2b5   : > { %1651 = vmatprep.subr.bf16.mxu1 %v2269_v0 }
 0x2b6   : > { %v896_v28 = vpop.permute.xlu0 %895  ;;  %v1009_v31 = vpop.permute.xlu1 %1008 }
 0x2ba   : > { %v1122_v30 = vpop.permute.xlu0 %1121  ;;  %v1120_v33 = vpop.permute.xlu1 %1119 }
 0x2bb   : > { %1642 = vmatmul.mubr.msk.bf16.vlgmr.msra.gmra.mrb[8].mxu1 %vm787_vm2, %v896_v28  ;;  %v1127_v32 = vsel %vm787_vm2, %v1122_v30, 0 }
 0x2bc   : > { %1652 = vmatpush3.bf16.xpose.msra.mxu1 %v1016_v29  ;;  %1653 = vmatprep.mubr.msk.bf16.mxu1 %vm2270_vm0, %v2269_v0 }
 0x2bd   : > { %1663 = vmatprep.subr.bf16.mxu1 %v2269_v0 }
 0x2c3   : > { %1654 = vmatmul.mubr.msk.bf16.vlgmr.msra.gmra.mrb[12].mxu1 %vm787_vm2, %v1009_v31 }
 0x2c4   : > { %1664 = vmatpush3.bf16.xpose.msra.mxu1 %v1127_v32  ;;  %1665 = vmatprep.mubr.msk.bf16.mxu1 %vm2270_vm0, %v2269_v0 }
 0x2c5   : > { %1675 = vmatprep.subr.bf16.mxu1 %v2269_v0 }
 0x2cb   : > { %1666 = vmatmul.mubr.msk.bf16.vlgmr.msra.gmra.mrb[16].mxu1 %vm787_vm2, %v1120_v33 }
 0x2cc   : > { %1679 = vmatprep.mubr.msk.bf16.mxu1 %vm2270_vm0, %v2269_v0  ;;  %1676 = vmatpush3.bf16.msra.mxu1 %v1836_v45 }
 0x2cd   : > { %1677 = vmatprep.subr.bf16.mxu1 %v2269_v0 }
 0x31c   : > { %v828_v34 = vpop.f32.mrb[4].mxu1 }
 0x31d   : > { %v1631_v35 = vpop.f32.mrb[5].mxu1  ;;  %v834_v36 = vsel %vm787_vm2, %v828_v34, -inf }
 0x31e   : > { %835 = vmax.xlane.f32.xlu0 %v834_v36  ;;  %v831_v37 = vpop.f32.mrb[6].mxu1 }
 0x31f   : > { %v1632_v38 = vpop.f32.mrb[7].mxu1 }
 0x38e   : > { %v940_v47 = vpop.f32.mrb[8].mxu1 }
 0x38f   : > { %v1643_v48 = vpop.f32.mrb[9].mxu1  ;;  %v946_v49 = vsel %vm787_vm2, %v940_v47, -inf }
 0x390   : > { %947 = vmax.xlane.f32.xlu1 %v946_v49  ;;  %v943_v50 = vpop.f32.mrb[10].mxu1  ;;  %v1837_v49 = vld [vmem:[#allocation13 + $0x8] sm:$0xff]  }
 0x391   : > { %v1644_v51 = vpop.f32.mrb[11].mxu1  ;;  %1678 = vmatpush3.bf16.msra.mxu1 %v1837_v49 }
 0x396   : > { %v1052_v52 = vpop.f32.mrb[12].mxu1 }
 0x397   : > { %v1655_v53 = vpop.f32.mrb[13].mxu1  ;;  %v1058_v54 = vsel %vm787_vm2, %v1052_v52, -inf }
 0x398   : > { %1059 = vmax.xlane.f32.xlu0 %v1058_v54  ;;  %v1055_v55 = vpop.f32.mrb[14].mxu1 }
 0x399   : > { %v1656_v56 = vpop.f32.mrb[15].mxu1 }
 0x39e   : > { %v1163_v57 = vpop.f32.mrb[16].mxu1 }
 0x39f   : > { %v1667_v58 = vpop.f32.mrb[17].mxu1  ;;  %v1169_v59 = vsel %vm787_vm2, %v1163_v57, -inf }
 0x3a0   : > { %1170 = vmax.xlane.f32.xlu0 %v1169_v59  ;;  %v1166_v60 = vpop.f32.mrb[18].mxu1 }
 0x3a1   : > { %v1668_v61 = vpop.f32.mrb[19].mxu1 }
 0x3ab   : > { %v836_v62 = vpop.xlane.xlu0 %835 }
 0x3ac   : > { %v837_v63 = vsub.f32 %v828_v34, %v836_v62 }
 0x3ae   : > { %v838_v1 = vmul.f32 1.442695, %v837_v63 }
 0x3b0   : > { %1838 = vpow2.f32 %v838_v1 }
 0x3ba   : > { %v1839_v2 = vpop.eup %1838 }
 0x3bb   : > { %v840_v3 = vsel %vm787_vm2, %v1839_v2, 0.0 }
 0x3bc   : > { %841 = vadd.xlane.f32.xlu1 %v840_v3 }
 0x3cd   : > { %959 = vrot.lane.b32.xlu1 %v786_v44, %s2272_s29 }
 0x41d   : > { %v948_v4 = vpop.xlane.xlu1 %947 }
 0x41e   : > { %v949_v5 = vsub.f32 %v940_v47, %v948_v4 }
 0x420   : > { %v950_v6 = vmul.f32 1.442695, %v949_v5  ;;  %v1567_v5 = vld [vmem:[#allocation19] ss:$0 sm:$0xff] }
 0x422   : > { %1840 = vpow2.f32 %v950_v6 }
 0x425   : > { %v1060_v7 = vpop.xlane.xlu0 %1059 }
 0x426   : > { %v1061_v8 = vsub.f32 %v1052_v52, %v1060_v7 }
 0x428   : > { %v1062_v9 = vmul.f32 1.442695, %v1061_v8 }
 0x42a   : > { %1842 = vpow2.f32 %v1062_v9 }
 0x42c   : > { %v1841_v10 = vpop.eup %1840 }
 0x42d   : > { %v1171_v11 = vpop.xlane.xlu0 %1170  ;;  %v952_v12 = vsel %vm787_vm2, %v1841_v10, 0.0 }
 0x42e   : > { %v1172_v13 = vsub.f32 %v1163_v57, %v1171_v11  ;;  %953 = vadd.xlane.f32.xlu0 %v952_v12 }
 0x430   : > { %v1173_v14 = vmul.f32 1.442695, %v1172_v13 }
 0x432   : > { %1844 = vpow2.f32 %v1173_v14 }
 0x434   : > { %v1843_v15 = vpop.eup %1842 }
 0x435   : > { %v1064_v16 = vsel %vm787_vm2, %v1843_v15, 0.0 }
 0x436   : > { %1065 = vadd.xlane.f32.xlu1 %v1064_v16 }
 0x43c   : > { %v1845_v17 = vpop.eup %1844 }
 0x43d   : > { %v1175_v18 = vsel %vm787_vm2, %v1845_v17, 0.0 }
 0x43e   : > { %1176 = vadd.xlane.f32.xlu0 %v1175_v18 }
 0x447   : > { %1181 = vrot.lane.b32.xlu1 %v786_v44, %s2273_s17 }
 0x449   : > { %v842_v19 = vpop.xlane.xlu1 %841 }
 0x44a   : > { %1846 = vrcp.f32 %v842_v19 }
 0x44d   : > { %v960_v21 = vpop.permute.xlu1 %959 }
 0x44e   : > { %v965_v24 = vsel %vm849_vm3, %v960_v21, 0 }
 0x454   : > { %v1847_v20 = vpop.eup %1846  ;;  %1070 = vrot.lane.b32.xlu0 %v786_v44, %s2271_s26 }
 0x455   : > { %v844_v22 = vmul.f32 %v1847_v20, %v1839_v2 }
 0x457   : > { %v845_v23 = vpack.c.bf16 %v844_v22, %v844_v22 }
 0x459   : > { %1636 = vmatmul.mubr.msk.bf16.vlgmr.msra.gmra.mrb[8].mxu0 %vm787_vm2, %v845_v23 }
 0x45a   : > { %1646 = vmatpush3.bf16.msra.mxu0 %v965_v24  ;;  %1647 = vmatprep.mubr.msk.bf16.mxu0 %vm2270_vm0, %v2269_v0 }
 0x45b   : > { %1657 = vmatprep.subr.bf16.mxu0 %v2269_v0 }
 0x4bb   : > { %v954_v25 = vpop.xlane.xlu0 %953 }
 0x4bc   : > { %1848 = vrcp.f32 %v954_v25 }
 0x4c3   : > { %v1066_v26 = vpop.xlane.xlu1 %1065 }
 0x4c4   : > { %1850 = vrcp.f32 %v1066_v26 }
 0x4c6   : > { %v1849_v27 = vpop.eup %1848 }
 0x4c7   : > { %v956_v28 = vmul.f32 %v1849_v27, %v1841_v10  ;;  %v1182_v35 = vpop.permute.xlu1 %1181 }
 0x4c8   : > { %v1187_v37 = vsel %vm849_vm3, %v1182_v35, 0 }
 0x4c9   : > { %v957_v29 = vpack.c.bf16 %v956_v28, %v956_v28 }
 0x4cb   : > { %v1177_v30 = vpop.xlane.xlu0 %1176  ;;  %1648 = vmatmul.mubr.msk.bf16.vlgmr.msra.gmra.mrb[12].mxu0 %vm787_vm2, %v957_v29 }
 0x4cc   : > { %1852 = vrcp.f32 %v1177_v30  ;;  %1659 = vmatprep.mubr.msk.bf16.mxu0 %vm2270_vm0, %v2269_v0 }
 0x4ce   : > { %v1851_v31 = vpop.eup %1850 }
 0x4cf   : > { %v1068_v32 = vmul.f32 %v1851_v31, %v1843_v15  ;;  %v1071_v33 = vpop.permute.xlu0 %1070 }
 0x4d0   : > { %v1076_v34 = vsel %vm849_vm3, %v1071_v33, 0 }
 0x4d1   : > { %1658 = vmatpush3.bf16.msra.mxu0 %v1076_v34  ;;  %v1069_v36 = vpack.c.bf16 %v1068_v32, %v1068_v32 }
 0x4d2   : > { %1669 = vmatprep.subr.bf16.mxu0 %v2269_v0 }
 0x4d4   : > { %1660 = vmatmul.mubr.msk.bf16.vlgmr.msra.gmra.mrb[16].mxu0 %vm787_vm2, %v1069_v36 }
 0x4d5   : > { %1670 = vmatpush3.bf16.msra.mxu0 %v1187_v37  ;;  %1671 = vmatprep.mubr.msk.bf16.mxu0 %vm2270_vm0, %v2269_v0 }
 0x4d6   : > { %v1853_v38 = vpop.eup %1852 }
 0x4d7   : > { %v1179_v39 = vmul.f32 %v1853_v38, %v1845_v17 }
 0x4d9   : > { %v1180_v40 = vpack.c.bf16 %v1179_v39, %v1179_v39 }
 0x4dc   : > { %1672 = vmatmul.mubr.msk.bf16.vlgmr.msra.gmra.mrb[20].mxu0 %vm787_vm2, %v1180_v40 }
 0x52c   : > { %v887_v41 = vpop.f32.mrb[8].mxu0 }
 0x52d   : > { %v1637_v42 = vpop.f32.mrb[9].mxu0  ;;  %v893_v62 = vpack.c.bf16 %v887_v41, %v887_v41 }
 0x52e   : > { %v890_v43 = vpop.f32.mrb[10].mxu0 }
 0x52f   : > { %v1638_v44 = vpop.f32.mrb[11].mxu0 }
 0x59e   : > { %v1001_v46 = vpop.f32.mrb[12].mxu0 }
 0x59f   : > { %v1007_v47 = vpack.c.bf16 %v1001_v46, %v1001_v46  ;;  %v1649_v48 = vpop.f32.mrb[13].mxu0 }
 0x5a0   : > { %v1004_v50 = vpop.f32.mrb[14].mxu0 }
 0x5a1   : > { %1231 = vrot.lane.b32.xlu1 %v1007_v47, %s2274_s9  ;;  %v1650_v51 = vpop.f32.mrb[15].mxu0 }
 0x5a7   : > { %v1112_v52 = vpop.f32.mrb[16].mxu0 }
 0x5a8   : > { %v1118_v53 = vpack.c.bf16 %v1112_v52, %v1112_v52  ;;  %v1661_v54 = vpop.f32.mrb[17].mxu0 }
 0x5a9   : > { %v1115_v55 = vpop.f32.mrb[18].mxu0 }
 0x5aa   : > { %1234 = vrot.lane.b32.xlu0 %v1118_v53, %s2275_s28  ;;  %v1662_v56 = vpop.f32.mrb[19].mxu0 }
 0x5af   : > { %v1223_v57 = vpop.f32.mrb[20].mxu0 }
 0x5b0   : > { %v1229_v58 = vpack.c.bf16 %v1223_v57, %v1223_v57  ;;  %v1673_v59 = vpop.f32.mrb[21].mxu0 }
 0x5b1   : > { %v1226_v60 = vpop.f32.mrb[22].mxu0 }
 0x5b2   : > { %1237 = vrot.lane.b32.xlu1 %v1229_v58, %s2276_s25  ;;  %v1674_v0 = vpop.f32.mrb[23].mxu0 }
 0x613   : > { %v1232_v61 = vpop.permute.xlu1 %1231 }
 0x614   : > { %v1241_v1 = vsel %vm787_vm2, %v893_v62, %v1232_v61 }
 0x61c   : > { %v1235_v63 = vpop.permute.xlu0 %1234 }
 0x61d   : > { %v1244_v2 = vsel %vm1242_vm4, %v1241_v1, %v1235_v63 }
 0x624   : > { %v1238_v3 = vpop.permute.xlu1 %1237 }
 0x625   : > { %v1247_v4 = vsel %vm1245_vm5, %v1244_v2, %v1238_v3 }
 0x626   : > { %1680 = vmatmul.mubr.msk.bf16.vlgmr.msra.gmra.mrb[20].mxu1 %vm608_vm1, %v1247_v4 }
 0x6f9   : > { %v1307_v6 = vpop.f32.mrb[20].mxu1 }
 0x6fa   : > { %v1308_v7 = vadd.f32 %v1567_v5, %v1307_v6  ;;  %v1681_v8 = vpop.f32.mrb[21].mxu1 }
 0x6fb   : > { %v1310_v9 = vpop.f32.mrb[22].mxu1 }
 0x6fc   : > { %v1682_v10 = vpop.f32.mrb[23].mxu1  ;;  %1313 = vst.msk [vmem:[%s580_s2] sm:$0xff] %vm608_vm1, %v1308_v7 }
 0x6fd   : > { %2181 = shalt.err (!%p2178_p3)
}
 0x6fe   : > { %s2182_s21 = scalar_lea.hbm %s2821_s12, 128  ;;  %s2186_s26 = scalar_lea.hbm %s2953_s15, 512 }
 0x6ff   : > { %p2183_p0 = scmp.ne.s32.totalorder %s2821_s12, %s2182_s21  ;;  %p2187_p5 = scmp.lt.u32.totalorder %s2821_s12, %s2953_s15 }
 0x700   : > { %p2188_p13 = scmp.lt.u32.totalorder %s2186_s26, %s2182_s21  ;;  %p2190_p7 = scmp.lt.u32.totalorder %s2182_s21, %s2821_s12 }
 0x701   : > { %p2184_p4 = pnand %p2183_p0, %p2954_p12 }
 0x702   : > { %p2189_p6 = por %p2188_p13, %p2187_p5 }
 0x703   : > { %p2185_p8 = pneg %p2184_p4 }
 0x704   : > { %p2191_p9 = por %p2190_p7, %p2189_p6 }
 0x706   : > { %p2192_p10 = pnand %p2191_p9, %p2185_p8 }
 0x708   : > { %2195 = shalt.err (!%p2192_p10)
}
 0x709   : > { %1721 = dma.vmem_to_hbm [thread:$0]  (%p2954_p12), %s2823_s11, 128, %s2821_s12, %s1315_s23  }
 0x70a PF: > { %s2955_s9 = sld [smem:[#allocation29_spill]]  ;;  %s2956_s28 = sld [smem:[#allocation28_spill]] }
 0x70b   : > { %s2957_s25 = sld [smem:[#allocation34_spill]] }
 0x710   : > { %p1779_p2 = scmp.ge.s32.totalorder %s2955_s9, 2  ;;  %s1340_s3 = sand.u32 1, %s2956_s28  }
 0x711   : > { %p2958_p1 = scmp.ne.s32.totalorder %s2957_s25, 0  ;;  %s1341_s22 = scalar_lea.sflag [#allocation4], %s1340_s3 }
 0x713   : > { %p1759_p11 = pnand %p1779_p2, %p2958_p1 }
 0x715   : > { %2237 = dma.done.wait (!%p1759_p11), %s1341_s22, 128  }
 0x716   : > { %2239 = vsyncadd (!%p1759_p11), %s1341_s22, 4294967168  ;;  %s2959_s20 = sld [smem:[#allocation31_spill]]  ;;  %s2960_s2 = sld [smem:[#allocation32_spill]] }
 0x717   : > { %s2961_s17 = smov %s2246_s18  ;;  %s2962_s18 = smov %s2250_s19 }
 0x71c   : > { %p31_p3 = scmp.ge.s32.totalorder %s2959_s20, 6   ;;  %s2963_s19 = smov %s2960_s2 }
 0x71e   :  { %33 = sbr.rel (!%p31_p3) target bundleno = 19 (0x13), region = 165 }
 0x725   :  { %1346 = vsyncpa [#allocation3], 1 }
 0x726   :  { %1348 = vsyncpa [#allocation3 + $0x1], 1 }
 0x727   :  { %1349 = vsyncpa [#allocation6], 1 }
 0x728   :  { %1351 = vsyncpa [#allocation6 + $0x1], 1 }
 0x729   :  { %1352 = vsyncpa [#allocation9], 1 }
 0x72a   :  { %1353 = vsyncpa [#allocation12], 1 }
 0x72b   :  { %1354 = vsyncpa [#allocation15], 1 }
 0x72c   :  { %1355 = vsyncpa [#allocation18], 1 }
 0x72d   :  { %1356 = vsyncpa [#allocation4], 1 }
 0x72e   :  { %1358 = vsyncpa [#allocation4 + $0x1], 1 }

</bundles_post_ra>
